<compile_context>
chip_gen: v7x
topology: tpu7x:2x2x1
jax: 0.10.0
libtpu: 0.0.40
codegen_flags: <defaults>
</compile_context>

<pallas_src>
import dataclasses

import jax
import jax.numpy as jnp
from jax.experimental import pallas as pl
from jax.experimental.pallas import tpu as pltpu

_LANE = 128      # lane width: last-dim tiling unit
_SUBLANE = 8     # f32 sublane width
_BF16_PACK = 16  # bf16 packs 16 rows per vreg


def _round_up(x, m):
    return ((x + m - 1) // m) * m


# ----------------------------------------------------------------------------
# TPU generation probing (defensive: falls back to safe defaults).
# ----------------------------------------------------------------------------
def _device_kind():
    try:
        return str(getattr(jax.devices()[0], "device_kind", "")).lower()
    except Exception:
        return ""


def _vmem_capacity_bytes():
    cap = None
    try:
        info = pltpu.get_tpu_info()
        cap = int(getattr(info, "vmem_capacity_bytes", 0)) or None
    except Exception:
        cap = None
    if cap is None:
        cap = 64 * 1024 * 1024 if "v7" in _device_kind() else 128 * 1024 * 1024
    return cap


def _num_tensorcores():
    # v7x has 2 TensorCores per chip; v5e / v6e have 1.
    return 2 if "v7" in _device_kind() else 1


def _mxu_m_floor():
    # v5e MXU is 128x128; v6e / v7x are 256x256.
    return 128 if "v5" in _device_kind() else 256


# ----------------------------------------------------------------------------
# PackedTensor stand-in (mirrors the PyTorch helper the DDP module unwraps).
# ----------------------------------------------------------------------------
@dataclasses.dataclass
class PackedTensor:
    tensor: jax.Array


# ----------------------------------------------------------------------------
# Weights pre-padded to lane-dense shapes & cast to bf16 ONCE (not per call).
# ----------------------------------------------------------------------------
@dataclasses.dataclass
class MLPParams:
    w1p: jax.Array   # (din_p, h_p)   bf16
    b1p: jax.Array   # (1,     h_p)   f32
    w2p: jax.Array   # (h_p, dout_p)  bf16
    b2p: jax.Array   # (1,   dout_p)  f32
    d_in: int
    hidden: int
    d_out: int


def prepare_mlp_params(w1, b1, w2, b2):
    d_in, hidden = w1.shape
    d_out = w2.shape[1]
    din_p = _round_up(max(d_in, _LANE), _LANE)
    h_p = _round_up(max(hidden, _LANE), _LANE)
    dout_p = _round_up(max(d_out, _LANE), _LANE)
    w1p = jnp.zeros((din_p, h_p), jnp.bfloat16).at[:d_in, :hidden].set(
        w1.astype(jnp.bfloat16))
    b1p = jnp.zeros((1, h_p), jnp.float32).at[:, :hidden].set(
        jnp.asarray(b1, jnp.float32).reshape(1, hidden))
    w2p = jnp.zeros((h_p, dout_p), jnp.bfloat16).at[:hidden, :d_out].set(
        w2.astype(jnp.bfloat16))
    b2p = jnp.zeros((1, dout_p), jnp.float32).at[:, :d_out].set(
        jnp.asarray(b2, jnp.float32).reshape(1, d_out))
    return MLPParams(w1p, b1p, w2p, b2p, d_in, hidden, d_out)


# ----------------------------------------------------------------------------
# Pallas kernels.
# ----------------------------------------------------------------------------
def _mlp_resident_kernel(x_ref, w1_ref, b1_ref, w2_ref, b2_ref, o_ref):
    """Fused Linear->ReLU->Linear; weights VMEM-resident, f32 accumulation."""
    h = jnp.dot(x_ref[...], w1_ref[...], preferred_element_type=jnp.float32)
    h = jnp.maximum(h + b1_ref[...], 0.0)
    y = jnp.dot(h.astype(w2_ref.dtype), w2_ref[...],
                preferred_element_type=jnp.float32)
    o_ref[...] = (y + b2_ref[...]).astype(o_ref.dtype)   # caller-dtype store


def _mlp_hidden_tiled_kernel(x_ref, w1_ref, b1_ref, w2_ref, b2_ref, o_ref,
                             acc_ref):
    """Hidden dim streamed over the last ('arbitrary') grid axis; f32 acc."""
    k = pl.program_id(1)

    @pl.when(k == 0)
    def _():
        acc_ref[...] = jnp.zeros_like(acc_ref)

    h = jnp.dot(x_ref[...], w1_ref[...], preferred_element_type=jnp.float32)
    h = jnp.maximum(h + b1_ref[...], 0.0)
    acc_ref[...] += jnp.dot(h.astype(w2_ref.dtype), w2_ref[...],
                            preferred_element_type=jnp.float32)

    @pl.when(k == pl.num_programs(1) - 1)
    def _():
        o_ref[...] = (acc_ref[...] + b2_ref[...]).astype(o_ref.dtype)


def _spec(shape, index_map, buffers=None):
    """BlockSpec with an optional multi/single-buffering hint (safe fallback)."""
    if buffers is not None and hasattr(pl, "Buffered"):
        try:
            return pl.BlockSpec(shape, index_map,
                                pipeline_mode=pl.Buffered(buffers))
        except TypeError:
            pass
    return pl.BlockSpec(shape, index_map)


def _pad_x(x, b_pad, din_p):
    B, d_in = x.shape
    if (B, d_in) == (b_pad, din_p) and x.dtype == jnp.bfloat16:
        return x
    return jnp.zeros((b_pad, din_p), jnp.bfloat16).at[:B, :d_in].set(
        x.astype(jnp.bfloat16))


# ----------------------------------------------------------------------------
# Forward: y = relu(x @ w1 + b1) @ w2 + b2 (weights already padded).
# ----------------------------------------------------------------------------
def mlp_forward(x, params, *, max_tile_b=512, max_tile_h=512,
                force_hidden_tiling=False):
    B, d_in = x.shape
    assert d_in == params.d_in
    out_dtype = x.dtype
    out_isz = jnp.dtype(out_dtype).itemsize

    din_p, h_p = params.w1p.shape
    dout_p = params.w2p.shape[1]

    cap = _vmem_capacity_bytes()
    budget = int(cap * 0.8)          # per-generation VMEM budget (~20% headroom)
    vmem_limit = int(cap * 0.8)
    num_tc = _num_tensorcores()
    min_m = _mxu_m_floor()

    # --- batch tile: multiples of 16 (bf16 packing); only split across TCs
    # --- when each piece still feeds the MXU; big tiles amortize grid overhead.
    b16 = _round_up(max(B, _BF16_PACK), _BF16_PACK)
    if b16 > max_tile_b:
        tile_b = _round_up(max_tile_b, _BF16_PACK)
    elif num_tc >= 2 and b16 >= num_tc * min_m:
        tile_b = _round_up(-(-b16 // num_tc), _BF16_PACK)
    else:
        tile_b = b16

    weight_bytes = (din_p * h_p + h_p * dout_p) * 2 \
        + _SUBLANE * (h_p + dout_p) * 4

    def resident_est(tb, xbuf, tn):
        # streamed x + streamed out + single-buffered resident weights/biases
        # + f32 intermediate h and its bf16 copy (VMEM spill of the hidden act)
        return (xbuf * tb * din_p * 2
                + 2 * tb * tn * out_isz
                + din_p * h_p * 2 + h_p * tn * 2
                + _SUBLANE * (h_p + tn) * 4
                + tb * h_p * 6)

    use_resident = (not force_hidden_tiling
                    and resident_est(_BF16_PACK, 2, dout_p) <= budget)

    if use_resident:
        # shrink the batch tile until the estimate fits the per-chip budget
        while resident_est(tile_b, 2, dout_p) > budget and tile_b > _BF16_PACK:
            tile_b = max(_BF16_PACK, _round_up(tile_b // 2, _BF16_PACK))
        b_pad = _round_up(b16, tile_b)
        grid_b = b_pad // tile_b

        # v7x occupancy: if the batch grid alone has <2 parallel steps, split
        # the output-feature axis across TensorCores instead of shrinking M.
        if num_tc >= 2 and grid_b < num_tc and dout_p % (num_tc * _LANE) == 0:
            tile_n = dout_p // num_tc
        else:
            tile_n = dout_p
        grid_n = dout_p // tile_n

        # deeper pipelining on the streamed x only when there are enough steps
        x_buffers = 3 if (grid_b >= 3
                          and resident_est(tile_b, 3, tile_n) <= budget) else None

        xp = _pad_x(x, b_pad, din_p)

        flops = 2 * b_pad * (din_p * h_p + h_p * dout_p)
        bytes_accessed = int(xp.size * 2 + weight_bytes
                             + b_pad * dout_p * out_isz)
        cost = pl.CostEstimate(flops=flops, transcendentals=0,
                               bytes_accessed=bytes_accessed)

        def call(use_hints):
            wbuf = 1 if use_hints else None                   # invariant w1/b1
            w2buf = 1 if (use_hints and grid_n == 1) else None  # invariant w2/b2
            xbuf = x_buffers if use_hints else None
            in_specs = [
                _spec((tile_b, din_p), lambda i, j: (i, 0), xbuf),   # x streamed
                _spec((din_p, h_p), lambda i, j: (0, 0), wbuf),      # w1 resident
                _spec((1, h_p), lambda i, j: (0, 0), wbuf),          # b1 resident
                _spec((h_p, tile_n), lambda i, j: (0, j), w2buf),    # w2
                _spec((1, tile_n), lambda i, j: (0, j), w2buf),      # b2
            ]
            return pl.pallas_call(
                _mlp_resident_kernel,
                out_shape=jax.ShapeDtypeStruct((b_pad, dout_p), out_dtype),
                grid=(grid_b, grid_n),
                in_specs=in_specs,
                out_specs=pl.BlockSpec((tile_b, tile_n), lambda i, j: (i, j)),
                compiler_params=pltpu.CompilerParams(
                    dimension_semantics=("parallel", "parallel"),
                    vmem_limit_bytes=vmem_limit),
                cost_estimate=cost,
            )(xp, params.w1p, params.b1p, params.w2p, params.b2p)

        try:
            out_p = call(True)
        except Exception:
            out_p = call(False)

    else:
        # ---- hidden-dim-tiled fallback (weights streamed over h chunks) ----
        tile_h = max(_LANE, (min(max_tile_h, h_p) // _LANE) * _LANE)
        while h_p % tile_h:
            tile_h -= _LANE

        def tiled_est(tb, th):
            return (2 * tb * din_p * 2
                    + 2 * tb * dout_p * out_isz
                    + 2 * din_p * th * 2 + 2 * th * dout_p * 2
                    + 2 * _SUBLANE * (th + dout_p) * 4
                    + tb * dout_p * 4        # f32 accumulator scratch
                    + tb * th * 6)           # f32 h chunk + its bf16 copy

        while tiled_est(tile_b, tile_h) > budget and tile_h > _LANE:
            tile_h = max(_LANE, tile_h - _LANE)
            while h_p % tile_h:
                tile_h -= _LANE
        while tiled_est(tile_b, tile_h) > budget and tile_b > _BF16_PACK:
            tile_b = max(_BF16_PACK, _round_up(tile_b // 2, _BF16_PACK))

        b_pad = _round_up(b16, tile_b)
        grid_b = b_pad // tile_b
        grid_h = h_p // tile_h

        xp = _pad_x(x, b_pad, din_p)

        flops = 2 * b_pad * (din_p * h_p + h_p * dout_p)
        bytes_accessed = int(xp.size * 2 + grid_b * weight_bytes
                             + b_pad * dout_p * out_isz)
        cost = pl.CostEstimate(flops=flops, transcendentals=0,
                               bytes_accessed=bytes_accessed)

        def call(use_hints):
            b2buf = 1 if use_hints else None   # b2 is grid-invariant
            in_specs = [
                _spec((tile_b, din_p), lambda i, k: (i, 0)),
                _spec((din_p, tile_h), lambda i, k: (0, k)),
                _spec((1, tile_h), lambda i, k: (0, k)),
                _spec((tile_h, dout_p), lambda i, k: (k, 0)),
                _spec((1, dout_p), lambda i, k: (0, 0), b2buf),
            ]
            return pl.pallas_call(
                _mlp_hidden_tiled_kernel,
                out_shape=jax.ShapeDtypeStruct((b_pad, dout_p), out_dtype),
                grid=(grid_b, grid_h),
                in_specs=in_specs,
                out_specs=pl.BlockSpec((tile_b, dout_p), lambda i, k: (i, 0)),
                scratch_shapes=[pltpu.VMEM((tile_b, dout_p), jnp.float32)],
                compiler_params=pltpu.CompilerParams(
                    dimension_semantics=("parallel", "arbitrary"),
                    vmem_limit_bytes=vmem_limit),
                cost_estimate=cost,
            )(xp, params.w1p, params.b1p, params.w2p, params.b2p)

        try:
            out_p = call(True)
        except Exception:
            out_p = call(False)

    # Slice away batch / lane padding; dtype is already the caller's dtype.
    return out_p[:B, :params.d_out]


# ----------------------------------------------------------------------------
# DDP-equivalent wrapper: unwrap PackedTensor args, then call the net.
# TODO(synk): gradient bucketing / all-reduce of DDP's backward is out of scope
# (only the forward unwrap semantics are implemented).
# ----------------------------------------------------------------------------
class DDP:
    def __init__(self, net):
        self.net = net

    def __call__(self, *args):
        inputs = [a.tensor if isinstance(a, PackedTensor) else a for a in args]
        return self.net(*inputs)


class SyntheticNet:
    """Deterministic 2-layer MLP whose forward runs inside a Pallas kernel."""

    def __init__(self, d_in=32, hidden=64, d_out=16, key=None, **fwd_kwargs):
        key = jax.random.PRNGKey(0) if key is None else key
        k1, k2, k3, k4 = jax.random.split(key, 4)
        s1 = 1.0 / jnp.sqrt(d_in)
        s2 = 1.0 / jnp.sqrt(hidden)
        self.w1 = jax.random.normal(k1, (d_in, hidden), jnp.float32) * s1
        self.b1 = jax.random.normal(k2, (1, hidden), jnp.float32) * s1
        self.w2 = jax.random.normal(k3, (hidden, d_out), jnp.float32) * s2
        self.b2 = jax.random.normal(k4, (1, d_out), jnp.float32) * s2
        # padding + bf16 cast done ONCE here (hoisted out of the hot path)
        self.params = prepare_mlp_params(self.w1, self.b1, self.w2, self.b2)
        self._fwd_kwargs = fwd_kwargs

    def __call__(self, x):
        return mlp_forward(x, self.params, **self._fwd_kwargs)


def _reference(x, net):
    """Plain-JAX reference mirroring the kernel's bf16-in / f32-acc math."""
    xq = x.astype(jnp.bfloat16).astype(jnp.float32)
    w1q = net.w1.astype(jnp.bfloat16).astype(jnp.float32)
    w2q = net.w2.astype(jnp.bfloat16).astype(jnp.float32)
    h = jnp.maximum(xq @ w1q + net.b1.astype(jnp.float32), 0.0)
    h = h.astype(jnp.bfloat16).astype(jnp.float32)
    y = h @ w2q + net.b2.astype(jnp.float32)
    return y.astype(x.dtype)


if __name__ == "__main__":
    key = jax.random.PRNGKey(0)
    kx1, kx2, kx3, kp1, kp2, kp3 = jax.random.split(key, 6)

    # --- case 1: small f32 batch, weights fully VMEM-resident --------------
    B, D_in, H, D_out = 8, 32, 64, 16
    x1 = jax.random.normal(kx1, (B, D_in), jnp.float32)
    net1 = SyntheticNet(D_in, H, D_out, key=kp1)
    model = DDP(net1)
    out1 = jax.block_until_ready(model(PackedTensor(x1)))   # DDP unwraps
    ref1 = _reference(x1, net1)
    assert out1.shape == (B, D_out)
    assert jnp.allclose(out1, ref1, atol=2e-2, rtol=2e-2)

    # --- case 2: bf16 activations, hidden-dim-tiled fallback path ----------
    B2, D2_in, H2, D2_out = 24, 48, 300, 20
    x2 = jax.random.normal(kx2, (B2, D2_in), jnp.float32).astype(jnp.bfloat16)
    net2 = SyntheticNet(D2_in, H2, D2_out, key=kp2,
                        force_hidden_tiling=True, max_tile_h=128)
    out2 = jax.block_until_ready(DDP(net2)(PackedTensor(x2)))
    ref2 = _reference(x2, net2)
    assert out2.shape == (B2, D2_out) and out2.dtype == x2.dtype
    assert jnp.allclose(out2.astype(jnp.float32), ref2.astype(jnp.float32),
                        atol=3e-2, rtol=3e-2)

    # --- case 3: multi-tile batch grid (streamed x, deeper pipeline) -------
    B3, D3_in, H3, D3_out = 1100, 64, 96, 32
    x3 = jax.random.normal(kx3, (B3, D3_in), jnp.float32)
    net3 = SyntheticNet(D3_in, H3, D3_out, key=kp3)
    out3 = jax.block_until_ready(DDP(net3)(PackedTensor(x3)))
    ref3 = _reference(x3, net3)
    assert out3.shape == (B3, D3_out)
    assert jnp.allclose(out3, ref3, atol=3e-2, rtol=3e-2)

    print("KERNEL_OK")
</pallas_src>

<mosaic_0001>
module attributes {stable_mosaic.version = 11 : i64} {
  func.func @_mlp_resident_kernel(%arg0: i32, %arg1: i32, %arg2: memref<16x128xbf16, #tpu.memory_space<vmem>>, %arg3: memref<128x128xbf16, #tpu.memory_space<vmem>>, %arg4: memref<1x128xf32, #tpu.memory_space<vmem>>, %arg5: memref<128x128xbf16, #tpu.memory_space<vmem>>, %arg6: memref<1x128xf32, #tpu.memory_space<vmem>>, %arg7: memref<16x128xf32, #tpu.memory_space<vmem>>) attributes {dimension_semantics = [#tpu.dimension_semantics<parallel>, #tpu.dimension_semantics<parallel>], iteration_bounds = array<i64: 1, 1>, scalar_prefetch = 0 : i64, scratch_operands = 0 : i64, tpu.core_type = #tpu.core_type<tc>, window_params = [{transform_indices = @transform_0, window_bounds = array<i64: 16, 128>}, {pipeline_mode = #tpu.pipeline_mode<synchronous>, transform_indices = @transform_1, window_bounds = array<i64: 128, 128>}, {pipeline_mode = #tpu.pipeline_mode<synchronous>, transform_indices = @transform_2, window_bounds = array<i64: 1, 128>}, {pipeline_mode = #tpu.pipeline_mode<synchronous>, transform_indices = @transform_3, window_bounds = array<i64: 128, 128>}, {pipeline_mode = #tpu.pipeline_mode<synchronous>, transform_indices = @transform_4, window_bounds = array<i64: 1, 128>}, {transform_indices = @transform_5, window_bounds = array<i64: 16, 128>}]} {
    %c0 = arith.constant 0 : index
    %c0_0 = arith.constant 0 : index
    %0 = vector.load %arg2[%c0, %c0_0] : memref<16x128xbf16, #tpu.memory_space<vmem>>, vector<16x128xbf16>
    %c0_1 = arith.constant 0 : index
    %c0_2 = arith.constant 0 : index
    %1 = vector.load %arg3[%c0_1, %c0_2] : memref<128x128xbf16, #tpu.memory_space<vmem>>, vector<128x128xbf16>
    %cst = arith.constant dense<0.000000e+00> : vector<16x128xf32>
    %2 = tpu.matmul %0, %1, %cst {dimension_numbers = #tpu.dot_dimension_numbers<[1], [0], [0], [1], [0, 0, 1, 1], [], []>} : vector<16x128xbf16>, vector<128x128xbf16>, vector<16x128xf32> -> vector<16x128xf32>
    %c0_3 = arith.constant 0 : index
    %c0_4 = arith.constant 0 : index
    %3 = vector.load %arg4[%c0_3, %c0_4] : memref<1x128xf32, #tpu.memory_space<vmem>>, vector<1x128xf32>
    %4 = vector.broadcast %3 : vector<1x128xf32> to vector<16x128xf32>
    %5 = arith.addf %2, %4 : vector<16x128xf32>
    %cst_5 = arith.constant 0.000000e+00 : f32
    %6 = vector.broadcast %cst_5 : f32 to vector<16x128xf32>
    %7 = arith.maximumf %5, %6 : vector<16x128xf32>
    %8 = arith.truncf %7 : vector<16x128xf32> to vector<16x128xbf16>
    %c0_6 = arith.constant 0 : index
    %c0_7 = arith.constant 0 : index
    %9 = vector.load %arg5[%c0_6, %c0_7] : memref<128x128xbf16, #tpu.memory_space<vmem>>, vector<128x128xbf16>
    %cst_8 = arith.constant dense<0.000000e+00> : vector<16x128xf32>
    %10 = tpu.matmul %8, %9, %cst_8 {dimension_numbers = #tpu.dot_dimension_numbers<[1], [0], [0], [1], [0, 0, 1, 1], [], []>} : vector<16x128xbf16>, vector<128x128xbf16>, vector<16x128xf32> -> vector<16x128xf32>
    %c0_9 = arith.constant 0 : index
    %c0_10 = arith.constant 0 : index
    %11 = vector.load %arg6[%c0_9, %c0_10] : memref<1x128xf32, #tpu.memory_space<vmem>>, vector<1x128xf32>
    %12 = vector.broadcast %11 : vector<1x128xf32> to vector<16x128xf32>
    %13 = arith.addf %10, %12 : vector<16x128xf32>
    %c0_11 = arith.constant 0 : index
    %c0_12 = arith.constant 0 : index
    %14 = vector.load %arg7[%c0_11, %c0_12] : memref<16x128xf32, #tpu.memory_space<vmem>>, vector<16x128xf32>
    tpu.vector_store %arg7[%c0_11, %c0_12], %13 {strides = array<i32>} : memref<16x128xf32, #tpu.memory_space<vmem>>, vector<16x128xf32>,
    return
  }
  func.func @transform_0(%arg0: i32, %arg1: i32) -> (i32, i32) {
    %c0_i32 = arith.constant 0 : i32
    %c0_i32_0 = arith.constant 0 : i32
    return %arg0, %c0_i32 : i32, i32
  }
  func.func @transform_1(%arg0: i32, %arg1: i32) -> (i32, i32) {
    %c0_i32 = arith.constant 0 : i32
    %c0_i32_0 = arith.constant 0 : i32
    %c0_i32_1 = arith.constant 0 : i32
    return %c0_i32, %c0_i32_0 : i32, i32
  }
  func.func @transform_2(%arg0: i32, %arg1: i32) -> (i32, i32) {
    %c0_i32 = arith.constant 0 : i32
    %c0_i32_0 = arith.constant 0 : i32
    %c0_i32_1 = arith.constant 0 : i32
    return %c0_i32, %c0_i32_0 : i32, i32
  }
  func.func @transform_3(%arg0: i32, %arg1: i32) -> (i32, i32) {
    %c0_i32 = arith.constant 0 : i32
    %c0_i32_0 = arith.constant 0 : i32
    return %c0_i32, %arg1 : i32, i32
  }
  func.func @transform_4(%arg0: i32, %arg1: i32) -> (i32, i32) {
    %c0_i32 = arith.constant 0 : i32
    %c0_i32_0 = arith.constant 0 : i32
    return %c0_i32, %arg1 : i32, i32
  }
  func.func @transform_5(%arg0: i32, %arg1: i32) -> (i32, i32) {
    %c0_i32 = arith.constant 0 : i32
    return %arg0, %arg1 : i32, i32
  }
}

module attributes {stable_mosaic.version = 11 : i64} {
  func.func @_mlp_resident_kernel(%arg0: i32, %arg1: i32, %arg2: memref<16x128xbf16, #tpu.memory_space<vmem>>, %arg3: memref<128x128xbf16, #tpu.memory_space<vmem>>, %arg4: memref<1x128xf32, #tpu.memory_space<vmem>>, %arg5: memref<128x128xbf16, #tpu.memory_space<vmem>>, %arg6: memref<1x128xf32, #tpu.memory_space<vmem>>, %arg7: memref<16x128xf32, #tpu.memory_space<vmem>>) attributes {dimension_semantics = [#tpu.dimension_semantics<parallel>, #tpu.dimension_semantics<parallel>], iteration_bounds = array<i64: 1, 1>, scalar_prefetch = 0 : i64, scratch_operands = 0 : i64, tpu.core_type = #tpu.core_type<tc>, window_params = [{transform_indices = @transform_0, window_bounds = array<i64: 16, 128>}, {pipeline_mode = #tpu.pipeline_mode<synchronous>, transform_indices = @transform_1, window_bounds = array<i64: 128, 128>}, {pipeline_mode = #tpu.pipeline_mode<synchronous>, transform_indices = @transform_2, window_bounds = array<i64: 1, 128>}, {transform_indices = @transform_3, window_bounds = array<i64: 128, 128>}, {transform_indices = @transform_4, window_bounds = array<i64: 1, 128>}, {transform_indices = @transform_5, window_bounds = array<i64: 16, 128>}]} {
    %c0 = arith.constant 0 : index
    %c0_0 = arith.constant 0 : index
    %0 = vector.load %arg2[%c0, %c0_0] : memref<16x128xbf16, #tpu.memory_space<vmem>>, vector<16x128xbf16>
    %c0_1 = arith.constant 0 : index
    %c0_2 = arith.constant 0 : index
    %1 = vector.load %arg3[%c0_1, %c0_2] : memref<128x128xbf16, #tpu.memory_space<vmem>>, vector<128x128xbf16>
    %cst = arith.constant dense<0.000000e+00> : vector<16x128xf32>
    %2 = tpu.matmul %0, %1, %cst {dimension_numbers = #tpu.dot_dimension_numbers<[1], [0], [0], [1], [0, 0, 1, 1], [], []>} : vector<16x128xbf16>, vector<128x128xbf16>, vector<16x128xf32> -> vector<16x128xf32>
    %c0_3 = arith.constant 0 : index
    %c0_4 = arith.constant 0 : index
    %3 = vector.load %arg4[%c0_3, %c0_4] : memref<1x128xf32, #tpu.memory_space<vmem>>, vector<1x128xf32>
    %4 = vector.broadcast %3 : vector<1x128xf32> to vector<16x128xf32>
    %5 = arith.addf %2, %4 : vector<16x128xf32>
    %cst_5 = arith.constant 0.000000e+00 : f32
    %6 = vector.broadcast %cst_5 : f32 to vector<16x128xf32>
    %7 = arith.maximumf %5, %6 : vector<16x128xf32>
    %8 = arith.truncf %7 : vector<16x128xf32> to vector<16x128xbf16>
    %c0_6 = arith.constant 0 : index
    %c0_7 = arith.constant 0 : index
    %9 = vector.load %arg5[%c0_6, %c0_7] : memref<128x128xbf16, #tpu.memory_space<vmem>>, vector<128x128xbf16>
    %cst_8 = arith.constant dense<0.000000e+00> : vector<16x128xf32>
    %10 = tpu.matmul %8, %9, %cst_8 {dimension_numbers = #tpu.dot_dimension_numbers<[1], [0], [0], [1], [0, 0, 1, 1], [], []>} : vector<16x128xbf16>, vector<128x128xbf16>, vector<16x128xf32> -> vector<16x128xf32>
    %c0_9 = arith.constant 0 : index
    %c0_10 = arith.constant 0 : index
    %11 = vector.load %arg6[%c0_9, %c0_10] : memref<1x128xf32, #tpu.memory_space<vmem>>, vector<1x128xf32>
    %12 = vector.broadcast %11 : vector<1x128xf32> to vector<16x128xf32>
    %13 = arith.addf %10, %12 : vector<16x128xf32>
    %c0_11 = arith.constant 0 : index
    %c0_12 = arith.constant 0 : index
    %14 = vector.load %arg7[%c0_11, %c0_12] : memref<16x128xf32, #tpu.memory_space<vmem>>, vector<16x128xf32>
    tpu.vector_store %arg7[%c0_11, %c0_12], %13 {strides = array<i32>} : memref<16x128xf32, #tpu.memory_space<vmem>>, vector<16x128xf32>,
    return
  }
  func.func @transform_0(%arg0: i32, %arg1: i32) -> (i32, i32) {
    %c0_i32 = arith.constant 0 : i32
    %c0_i32_0 = arith.constant 0 : i32
    return %arg0, %c0_i32 : i32, i32
  }
  func.func @transform_1(%arg0: i32, %arg1: i32) -> (i32, i32) {
    %c0_i32 = arith.constant 0 : i32
    %c0_i32_0 = arith.constant 0 : i32
    %c0_i32_1 = arith.constant 0 : i32
    return %c0_i32, %c0_i32_0 : i32, i32
  }
  func.func @transform_2(%arg0: i32, %arg1: i32) -> (i32, i32) {
    %c0_i32 = arith.constant 0 : i32
    %c0_i32_0 = arith.constant 0 : i32
    %c0_i32_1 = arith.constant 0 : i32
    return %c0_i32, %c0_i32_0 : i32, i32
  }
  func.func @transform_3(%arg0: i32, %arg1: i32) -> (i32, i32) {
    %c0_i32 = arith.constant 0 : i32
    %c0_i32_0 = arith.constant 0 : i32
    return %c0_i32, %arg1 : i32, i32
  }
  func.func @transform_4(%arg0: i32, %arg1: i32) -> (i32, i32) {
    %c0_i32 = arith.constant 0 : i32
    %c0_i32_0 = arith.constant 0 : i32
    return %c0_i32, %arg1 : i32, i32
  }
  func.func @transform_5(%arg0: i32, %arg1: i32) -> (i32, i32) {
    %c0_i32 = arith.constant 0 : i32
    return %arg0, %arg1 : i32, i32
  }
}

</mosaic_0001>

<bundles_post_ra>
// kernel: tpu_custom_call.1
= control target key start
LH: loop header
LB: loop body
LE: loop exit
PB: predicated region body
PF: predicated region fallthrough
CT: control target
= control target key end

     0   :  { %10 = vsyncpa [#allocation3], 0  ;;  %s718_s0 = inlined_call_operand.hbm [shape: bf16[16,128], index: 0, kind: input, shape index: {}]   ;;  %s719_s1 = inlined_call_operand.hbm [shape: bf16[128,128], index: 1, kind: input, shape index: {}]   ;;  %s720_s2 = inlined_call_operand.hbm [shape: f32[1,128], index: 2, kind: input, shape index: {}]   ;;  %s721_s3 = inlined_call_operand.hbm [shape: bf16[128,128], index: 3, kind: input, shape index: {}]   ;;  %s722_s4 = inlined_call_operand.hbm [shape: f32[1,128], index: 4, kind: input, shape index: {}]   ;;  %s723_s5 = inlined_call_operand.hbm [shape: f32[16,128], index: 5, kind: output, shape index: {}]  }
   0x1   :  { %11 = vsyncpa [#allocation6], 0 }
   0x2   :  { %12 = vsyncpa [#allocation9], 0 }
   0x3   :  { %13 = vsyncpa [#allocation4], 0  ;;  %s588_s18 = smov [#allocation5]   ;;  %s589_s20 = smov [#allocation8]  }
   0x4   :  { %s31_s19 = sshll.u32 %s588_s18, 4  ;;  %s53_s21 = sshll.u32 %s589_s20, 4  ;;  %s32_s19 = int_to_ptr.vmem [resolvable:$true] %s31_s19  ;;  %s630_s21 = int_to_ptr.vmem [resolvable:$true] %s53_s21 }
   0x5   :  { %s448_s24 = scalar_lea.hbm %s719_s1, 1024 }
   0x6   :  { %p449_p0 = scmp.ne.s32.totalorder %s719_s1, %s448_s24  ;;  %p452_p1 = scmp.lt.u32.totalorder %s448_s24, %s719_s1 }
   0x8   :  { %p454_p2 = pnand %p452_p1, %p449_p0 }
   0xa   :  { %457 = shalt.err (!%p454_p2)
}
   0xb   :  { %s458_s29 = scalar_lea.vmem %s32_s19, 1024  ;;  %p463_p4 = scmp.lt.s32.totalorder %s32_s19, %s32_s19 }
   0xc   :  { %p459_p3 = scmp.ne.s32.totalorder %s32_s19, %s458_s29  ;;  %p464_p5 = scmp.lt.s32.totalorder %s458_s29, %s458_s29 }
   0xe   :  { %p465_p6 = por %p464_p5, %p463_p4 }
  0x10   :  { %p466_p7 = pnand %p465_p6, %p459_p3 }
  0x12   :  { %469 = shalt.err (!%p466_p7)
}
  0x13   :  { %s590_s30 = smov 64   ;;  %s591_s6 = smov 4  }
  0x14   :  { %37 = dma.hbm_to_vmem [thread:$0]  %s719_s1, 1024, %s32_s19, [#allocation6], %s590_s30, %s590_s30, %s591_s6  }
  0x15   :  { %s470_s11 = scalar_lea.hbm %s721_s3, 1024 }
  0x16   :  { %p471_p8 = scmp.ne.s32.totalorder %s721_s3, %s470_s11  ;;  %p474_p9 = scmp.lt.u32.totalorder %s470_s11, %s721_s3 }
  0x18   :  { %p476_p10 = pnand %p474_p9, %p471_p8 }
  0x1a   :  { %479 = shalt.err (!%p476_p10)
}
  0x1b   :  { %s480_s16 = scalar_lea.vmem %s630_s21, 1024  ;;  %p485_p12 = scmp.lt.s32.totalorder %s630_s21, %s630_s21 }
  0x1c   :  { %p481_p11 = scmp.ne.s32.totalorder %s630_s21, %s480_s16  ;;  %p486_p13 = scmp.lt.s32.totalorder %s480_s16, %s480_s16 }
  0x1e   :  { %p487_p0 = por %p486_p13, %p485_p12 }
  0x20   :  { %p488_p1 = pnand %p487_p0, %p481_p11 }
  0x22   :  { %491 = shalt.err (!%p488_p1)
}
  0x23   :  { %59 = dma.hbm_to_vmem [thread:$0]  %s721_s3, 1024, %s630_s21, [#allocation9], %s590_s30, %s590_s30, %s591_s6  }
  0x24   :  { %s592_s18 = smov [#allocation2]   ;;  %s593_s20 = smov [#allocation7]  }
  0x25   :  { %s19_s19 = sshll.u32 %s592_s18, 4  ;;  %s44_s22 = sshll.u32 %s593_s20, 4  ;;  %s20_s19 = int_to_ptr.vmem [resolvable:$true] %s19_s19  ;;  %s45_s22 = int_to_ptr.vmem [resolvable:$true] %s44_s22 }
  0x26   :  { %s492_s25 = scalar_lea.hbm %s718_s0, 128 }
  0x27   :  { %p493_p2 = scmp.ne.s32.totalorder %s718_s0, %s492_s25  ;;  %p496_p3 = scmp.lt.u32.totalorder %s492_s25, %s718_s0 }
  0x29   :  { %p498_p4 = pnand %p496_p3, %p493_p2 }
  0x2b   :  { %501 = shalt.err (!%p498_p4)
}
  0x2c   :  { %s502_s3 = scalar_lea.vmem %s20_s19, 128  ;;  %p507_p6 = scmp.lt.s32.totalorder %s20_s19, %s20_s19 }
  0x2d   :  { %p503_p5 = scmp.ne.s32.totalorder %s20_s19, %s502_s3  ;;  %p508_p7 = scmp.lt.s32.totalorder %s502_s3, %s502_s3 }
  0x2f   :  { %p509_p8 = por %p508_p7, %p507_p6 }
  0x31   :  { %p510_p9 = pnand %p509_p8, %p503_p5 }
  0x33   :  { %513 = shalt.err (!%p510_p9)
}
  0x34   :  { %25 = dma.hbm_to_vmem [thread:$0]  %s718_s0, 128, %s20_s19, [#allocation3], %s590_s30, %s590_s30, %s591_s6  }
  0x35   :  { %s514_s10 = scalar_lea.hbm %s720_s2, 16 }
  0x36   :  { %p515_p10 = scmp.ne.s32.totalorder %s720_s2, %s514_s10  ;;  %p518_p11 = scmp.lt.u32.totalorder %s514_s10, %s720_s2 }
  0x38   :  { %p520_p12 = pnand %p518_p11, %p515_p10 }
  0x3a   :  { %523 = shalt.err (!%p520_p12)
}
  0x3b   :  { %s524_s15 = scalar_lea.vmem %s45_s22, 16  ;;  %s528_s16 = scalar_lea.vmem %s45_s22, 32 }
  0x3c   :  { %p525_p13 = scmp.ne.s32.totalorder %s45_s22, %s524_s15  ;;  %p529_p0 = scmp.lt.s32.totalorder %s45_s22, %s45_s22 }
  0x3d   :  { %p530_p1 = scmp.lt.s32.totalorder %s528_s16, %s524_s15 }
  0x3f   :  { %p531_p2 = por %p530_p1, %p529_p0 }
  0x41   :  { %p532_p3 = pnand %p531_p2, %p525_p13 }
  0x43   :  { %535 = shalt.err (!%p532_p3)
}
  0x44   :  { %47 = dma.hbm_to_vmem [thread:$0]  %s720_s2, 16, %s45_s22, [#allocation6]  }
  0x45   :  { %s594_s6 = smov [#allocation10]   ;;  %s536_s19 = scalar_lea.hbm %s722_s4, 16 }
  0x46   :  { %s66_s1 = sshll.u32 %s594_s6, 4  ;;  %p537_p4 = scmp.ne.s32.totalorder %s722_s4, %s536_s19  ;;  %s67_s1 = int_to_ptr.vmem [resolvable:$true] %s66_s1 }
  0x47   :  { %p540_p5 = scmp.lt.u32.totalorder %s536_s19, %s722_s4 }
  0x49   :  { %p542_p6 = pnand %p540_p5, %p537_p4 }
  0x4b   :  { %545 = shalt.err (!%p542_p6)
}
  0x4c   :  { %s546_s26 = scalar_lea.vmem %s67_s1, 16  ;;  %s550_s2 = scalar_lea.vmem %s67_s1, 32 }
  0x4d   :  { %p547_p7 = scmp.ne.s32.totalorder %s67_s1, %s546_s26  ;;  %p551_p8 = scmp.lt.s32.totalorder %s67_s1, %s67_s1 }
  0x4e   :  { %p552_p9 = scmp.lt.s32.totalorder %s550_s2, %s546_s26 }
  0x50   :  { %p553_p10 = por %p552_p9, %p551_p8 }
  0x52   :  { %p554_p11 = pnand %p553_p10, %p547_p7 }
  0x54   :  { %557 = shalt.err (!%p554_p11)
}
  0x55   :  { %69 = dma.hbm_to_vmem [thread:$0]  %s722_s4, 16, %s67_s1, [#allocation9]  }
  0x56   :  { %580 = dma.done.wait [#allocation3], 128  }
  0x57   :  { %581 = vsyncadd [#allocation3], 4294967168 }
  0x58   :  { %582 = dma.done.wait [#allocation6], 1040  }
  0x59   :  { %583 = vsyncadd [#allocation6], 4294966256 }
  0x5a   :  { %584 = dma.done.wait [#allocation9], 1040  }
  0x5b   :  { %585 = vsyncadd [#allocation9], 4294966256  ;;  %v595_v0 = vmov 0.0   ;;  %vm596_vm0 = vmmov 0   ;;  %v431_v1 = vld [vmem:[#allocation5] sm:$0xff]   ;;  %v432_v2 = vld [vmem:[#allocation5 + $0x8] sm:$0xff]  }
  0x5c   :  { %379 = vmatprep.subr.bf16.mxu0 %v595_v0  ;;  %395 = vmatprep.mubr.msk.bf16.mxu0 %vm596_vm0, %v595_v0  ;;  %v433_v3 = vld [vmem:[#allocation5 + $0x10] sm:$0xff]   ;;  %v440_v4 = vld [vmem:[#allocation8] sm:$0xff]   ;;  %v434_v5 = vld [vmem:[#allocation5 + $0x18] sm:$0xff]   ;;  %s597_s4 = smov [#allocation11]  }
  0x5d   :  { %399 = vmatprep.subr.bf16.mxu1 %v595_v0  ;;  %415 = vmatprep.mubr.msk.bf16.mxu1 %vm596_vm0, %v595_v0  ;;  %v441_v6 = vld [vmem:[#allocation8 + $0x8] sm:$0xff]   ;;  %v435_v7 = vld [vmem:[#allocation5 + $0x20] sm:$0xff]   ;;  %v442_v8 = vld [vmem:[#allocation8 + $0x10] sm:$0xff]   ;;  %s328_s28 = sshll.u32 %s597_s4, 4  ;;  %s329_s28 = int_to_ptr.vmem [resolvable:$true] %s328_s28 }
  0x5e   :  { %380 = vmatpush3.bf16.msra.mxu0 %v431_v1  ;;  %400 = vmatpush3.bf16.msra.mxu1 %v440_v4  ;;  %v436_v9 = vld [vmem:[#allocation5 + $0x28] sm:$0xff]   ;;  %v443_v10 = vld [vmem:[#allocation8 + $0x18] sm:$0xff]   ;;  %v437_v11 = vld [vmem:[#allocation5 + $0x30] sm:$0xff]   ;;  %s558_s29 = scalar_lea.vmem %s329_s28, 256  ;;  %p563_p13 = scmp.lt.s32.totalorder %s329_s28, %s329_s28 }
  0x5f   :  { %381 = vmatprep.subr.bf16.mxu0 %v595_v0  ;;  %401 = vmatprep.subr.bf16.mxu1 %v595_v0  ;;  %v444_v12 = vld [vmem:[#allocation8 + $0x20] sm:$0xff]   ;;  %v438_v13 = vld [vmem:[#allocation5 + $0x38] sm:$0xff]   ;;  %v445_v14 = vld [vmem:[#allocation8 + $0x28] sm:$0xff]   ;;  %p559_p12 = scmp.ne.s32.totalorder %s329_s28, %s558_s29  ;;  %p564_p0 = scmp.lt.s32.totalorder %s558_s29, %s558_s29 }
  0x60   :  { %v439_v15 = vld [vmem:[#allocation2] sm:$0xff]   ;;  %v342_v18 = vld [vmem:[#allocation7] ss:$0 sm:$0xff]  ;;  %v352_v28 = vld [vmem:[#allocation10] ss:$0 sm:$0xff] }
  0x61   :  { %v446_v16 = vld [vmem:[#allocation8 + $0x30] sm:$0xff]   ;;  %v447_v17 = vld [vmem:[#allocation8 + $0x38] sm:$0xff]   ;;  %p565_p1 = por %p564_p0, %p563_p13 }
  0x62   :  { %382 = vmatpush3.bf16.msra.mxu0 %v432_v2  ;;  %402 = vmatpush3.bf16.msra.mxu1 %v441_v6 }
  0x63   :  { %383 = vmatprep.subr.bf16.mxu0 %v595_v0  ;;  %403 = vmatprep.subr.bf16.mxu1 %v595_v0  ;;  %p566_p2 = pnand %p565_p1, %p559_p12 }
  0x66   :  { %384 = vmatpush3.bf16.msra.mxu0 %v433_v3  ;;  %404 = vmatpush3.bf16.msra.mxu1 %v442_v8 }
  0x67   :  { %385 = vmatprep.subr.bf16.mxu0 %v595_v0  ;;  %405 = vmatprep.subr.bf16.mxu1 %v595_v0 }
  0x6a   :  { %386 = vmatpush3.bf16.msra.mxu0 %v434_v5  ;;  %406 = vmatpush3.bf16.msra.mxu1 %v443_v10 }
  0x6b   :  { %387 = vmatprep.subr.bf16.mxu0 %v595_v0  ;;  %407 = vmatprep.subr.bf16.mxu1 %v595_v0 }
  0x6e   :  { %388 = vmatpush3.bf16.msra.mxu0 %v435_v7  ;;  %408 = vmatpush3.bf16.msra.mxu1 %v444_v12 }
  0x6f   :  { %389 = vmatprep.subr.bf16.mxu0 %v595_v0  ;;  %409 = vmatprep.subr.bf16.mxu1 %v595_v0 }
  0x72   :  { %390 = vmatpush3.bf16.msra.mxu0 %v436_v9  ;;  %410 = vmatpush3.bf16.msra.mxu1 %v445_v14 }
  0x73   :  { %391 = vmatprep.subr.bf16.mxu0 %v595_v0  ;;  %411 = vmatprep.subr.bf16.mxu1 %v595_v0 }
  0x76   :  { %392 = vmatpush3.bf16.msra.mxu0 %v437_v11  ;;  %412 = vmatpush3.bf16.msra.mxu1 %v446_v16 }
  0x77   :  { %393 = vmatprep.subr.bf16.mxu0 %v595_v0  ;;  %413 = vmatprep.subr.bf16.mxu1 %v595_v0 }
  0x7a   :  { %394 = vmatpush3.bf16.msra.mxu0 %v438_v13  ;;  %414 = vmatpush3.bf16.msra.mxu1 %v447_v17 }
  0x7d   :  { %396 = vmatmul.mubr.bf16.vlgmr.msra.gmra.mrb[0].mxu0 %v439_v15 }
 0x150   :  { %v199_v19 = vpop.f32.mrb[0].mxu0 }
 0x151   :  { %v200_v20 = vadd.f32 %v342_v18, %v199_v19  ;;  %v397_v21 = vpop.f32.mrb[1].mxu0 }
 0x152   :  { %v202_v22 = vpop.f32.mrb[2].mxu0 }
 0x153   :  { %v203_v23 = vadd.f32 %v342_v18, %v202_v22  ;;  %v398_v24 = vpop.f32.mrb[3].mxu0  ;;  %v206_v25 = vmax.f32 %v200_v20, 0.0 }
 0x155   :  { %v207_v26 = vmax.f32 %v203_v23, 0.0 }
 0x157   :  { %v208_v27 = vpack.c.bf16 %v207_v26, %v206_v25 }
 0x159   :  { %416 = vmatmul.mubr.bf16.vlgmr.msra.gmra.mrb[0].mxu1 %v208_v27 }
 0x22c   :  { %v314_v29 = vpop.f32.mrb[0].mxu1 }
 0x22d   :  { %v315_v30 = vadd.f32 %v352_v28, %v314_v29  ;;  %v417_v31 = vpop.f32.mrb[1].mxu1 }
 0x22e   :  { %v317_v32 = vpop.f32.mrb[2].mxu1 }
 0x22f   :  { %321 = vst [vmem:[#allocation11] sm:$0xff] %v315_v30  ;;  %v318_v33 = vadd.f32 %v352_v28, %v317_v32  ;;  %v418_v34 = vpop.f32.mrb[3].mxu1 }
 0x231   :  { %322 = vst [vmem:[#allocation11 + $0x8] sm:$0xff] %v318_v33 }
 0x232   :  { %569 = shalt.err (!%p566_p2)
}
 0x233   :  { %s570_s7 = scalar_lea.hbm %s723_s5, 256 }
 0x234   :  { %p571_p3 = scmp.ne.s32.totalorder %s723_s5, %s570_s7  ;;  %p574_p4 = scmp.lt.u32.totalorder %s570_s7, %s723_s5 }
 0x236   :  { %p576_p5 = pnand %p574_p4, %p571_p3 }
 0x238   :  { %579 = shalt.err (!%p576_p5)
}
 0x239   :  { %s598_s12 = smov 128   ;;  %s599_s13 = smov 8  }
 0x23a   :  { %334 = dma.vmem_to_hbm [thread:$0]  %s329_s28, 256, %s723_s5, [#allocation4], %s598_s12, %s598_s12, %s599_s13  }
 0x23b   :  { %586 = dma.done.wait [#allocation4], 256  }
 0x23c   :  { %587 = vsyncadd [#allocation4], 4294967040 }
 0x23d   :  { %338 = vsyncpa [#allocation3], 1 }
 0x23e   :  { %339 = vsyncpa [#allocation6], 1 }
 0x23f   :  { %340 = vsyncpa [#allocation9], 1 }
 0x240   :  { %341 = vsyncpa [#allocation4], 1 }

// kernel: tpu_custom_call.1
= control target key start
LH: loop header
LB: loop body
LE: loop exit
PB: predicated region body
PF: predicated region fallthrough
CT: control target
= control target key end

     0   :  { %10 = vsyncpa [#allocation3], 0  ;;  %s718_s0 = inlined_call_operand.hbm [shape: bf16[16,128], index: 0, kind: input, shape index: {}]   ;;  %s719_s1 = inlined_call_operand.hbm [shape: bf16[128,128], index: 1, kind: input, shape index: {}]   ;;  %s720_s2 = inlined_call_operand.hbm [shape: f32[1,128], index: 2, kind: input, shape index: {}]   ;;  %s721_s3 = inlined_call_operand.hbm [shape: bf16[128,128], index: 3, kind: input, shape index: {}]   ;;  %s722_s4 = inlined_call_operand.hbm [shape: f32[1,128], index: 4, kind: input, shape index: {}]   ;;  %s723_s5 = inlined_call_operand.hbm [shape: f32[16,128], index: 5, kind: output, shape index: {}]  }
   0x1   :  { %11 = vsyncpa [#allocation6], 0 }
   0x2   :  { %12 = vsyncpa [#allocation9], 0 }
   0x3   :  { %13 = vsyncpa [#allocation4], 0  ;;  %s588_s18 = smov [#allocation5]   ;;  %s589_s20 = smov [#allocation8]  }
   0x4   :  { %s31_s19 = sshll.u32 %s588_s18, 4  ;;  %s53_s21 = sshll.u32 %s589_s20, 4  ;;  %s32_s19 = int_to_ptr.vmem [resolvable:$true] %s31_s19  ;;  %s630_s21 = int_to_ptr.vmem [resolvable:$true] %s53_s21 }
   0x5   :  { %s448_s24 = scalar_lea.hbm %s719_s1, 1024 }
   0x6   :  { %p449_p0 = scmp.ne.s32.totalorder %s719_s1, %s448_s24  ;;  %p452_p1 = scmp.lt.u32.totalorder %s448_s24, %s719_s1 }
   0x8   :  { %p454_p2 = pnand %p452_p1, %p449_p0 }
   0xa   :  { %457 = shalt.err (!%p454_p2)
}
   0xb   :  { %s458_s29 = scalar_lea.vmem %s32_s19, 1024  ;;  %p463_p4 = scmp.lt.s32.totalorder %s32_s19, %s32_s19 }
   0xc   :  { %p459_p3 = scmp.ne.s32.totalorder %s32_s19, %s458_s29  ;;  %p464_p5 = scmp.lt.s32.totalorder %s458_s29, %s458_s29 }
   0xe   :  { %p465_p6 = por %p464_p5, %p463_p4 }
  0x10   :  { %p466_p7 = pnand %p465_p6, %p459_p3 }
  0x12   :  { %469 = shalt.err (!%p466_p7)
}
  0x13   :  { %s590_s30 = smov 64   ;;  %s591_s6 = smov 4  }
  0x14   :  { %37 = dma.hbm_to_vmem [thread:$0]  %s719_s1, 1024, %s32_s19, [#allocation6], %s590_s30, %s590_s30, %s591_s6  }
  0x15   :  { %s470_s11 = scalar_lea.hbm %s721_s3, 1024 }
  0x16   :  { %p471_p8 = scmp.ne.s32.totalorder %s721_s3, %s470_s11  ;;  %p474_p9 = scmp.lt.u32.totalorder %s470_s11, %s721_s3 }
  0x18   :  { %p476_p10 = pnand %p474_p9, %p471_p8 }
  0x1a   :  { %479 = shalt.err (!%p476_p10)
}
  0x1b   :  { %s480_s16 = scalar_lea.vmem %s630_s21, 1024  ;;  %p485_p12 = scmp.lt.s32.totalorder %s630_s21, %s630_s21 }
  0x1c   :  { %p481_p11 = scmp.ne.s32.totalorder %s630_s21, %s480_s16  ;;  %p486_p13 = scmp.lt.s32.totalorder %s480_s16, %s480_s16 }
  0x1e   :  { %p487_p0 = por %p486_p13, %p485_p12 }
  0x20   :  { %p488_p1 = pnand %p487_p0, %p481_p11 }
  0x22   :  { %491 = shalt.err (!%p488_p1)
}
  0x23   :  { %59 = dma.hbm_to_vmem [thread:$0]  %s721_s3, 1024, %s630_s21, [#allocation9], %s590_s30, %s590_s30, %s591_s6  }
  0x24   :  { %s592_s18 = smov [#allocation2]   ;;  %s593_s20 = smov [#allocation7]  }
  0x25   :  { %s19_s19 = sshll.u32 %s592_s18, 4  ;;  %s44_s22 = sshll.u32 %s593_s20, 4  ;;  %s20_s19 = int_to_ptr.vmem [resolvable:$true] %s19_s19  ;;  %s45_s22 = int_to_ptr.vmem [resolvable:$true] %s44_s22 }
  0x26   :  { %s492_s25 = scalar_lea.hbm %s718_s0, 128 }
  0x27   :  { %p493_p2 = scmp.ne.s32.totalorder %s718_s0, %s492_s25  ;;  %p496_p3 = scmp.lt.u32.totalorder %s492_s25, %s718_s0 }
  0x29   :  { %p498_p4 = pnand %p496_p3, %p493_p2 }
  0x2b   :  { %501 = shalt.err (!%p498_p4)
}
  0x2c   :  { %s502_s3 = scalar_lea.vmem %s20_s19, 128  ;;  %p507_p6 = scmp.lt.s32.totalorder %s20_s19, %s20_s19 }
  0x2d   :  { %p503_p5 = scmp.ne.s32.totalorder %s20_s19, %s502_s3  ;;  %p508_p7 = scmp.lt.s32.totalorder %s502_s3, %s502_s3 }
  0x2f   :  { %p509_p8 = por %p508_p7, %p507_p6 }
  0x31   :  { %p510_p9 = pnand %p509_p8, %p503_p5 }
  0x33   :  { %513 = shalt.err (!%p510_p9)
}
  0x34   :  { %25 = dma.hbm_to_vmem [thread:$0]  %s718_s0, 128, %s20_s19, [#allocation3], %s590_s30, %s590_s30, %s591_s6  }
  0x35   :  { %s514_s10 = scalar_lea.hbm %s720_s2, 16 }
  0x36   :  { %p515_p10 = scmp.ne.s32.totalorder %s720_s2, %s514_s10  ;;  %p518_p11 = scmp.lt.u32.totalorder %s514_s10, %s720_s2 }
  0x38   :  { %p520_p12 = pnand %p518_p11, %p515_p10 }
  0x3a   :  { %523 = shalt.err (!%p520_p12)
}
  0x3b   :  { %s524_s15 = scalar_lea.vmem %s45_s22, 16  ;;  %s528_s16 = scalar_lea.vmem %s45_s22, 32 }
  0x3c   :  { %p525_p13 = scmp.ne.s32.totalorder %s45_s22, %s524_s15  ;;  %p529_p0 = scmp.lt.s32.totalorder %s45_s22, %s45_s22 }
  0x3d   :  { %p530_p1 = scmp.lt.s32.totalorder %s528_s16, %s524_s15 }
  0x3f   :  { %p531_p2 = por %p530_p1, %p529_p0 }
  0x41   :  { %p532_p3 = pnand %p531_p2, %p525_p13 }
  0x43   :  { %535 = shalt.err (!%p532_p3)
}
  0x44   :  { %47 = dma.hbm_to_vmem [thread:$0]  %s720_s2, 16, %s45_s22, [#allocation6]  }
  0x45   :  { %s594_s6 = smov [#allocation10]   ;;  %s536_s19 = scalar_lea.hbm %s722_s4, 16 }
  0x46   :  { %s66_s1 = sshll.u32 %s594_s6, 4  ;;  %p537_p4 = scmp.ne.s32.totalorder %s722_s4, %s536_s19  ;;  %s67_s1 = int_to_ptr.vmem [resolvable:$true] %s66_s1 }
  0x47   :  { %p540_p5 = scmp.lt.u32.totalorder %s536_s19, %s722_s4 }
  0x49   :  { %p542_p6 = pnand %p540_p5, %p537_p4 }
  0x4b   :  { %545 = shalt.err (!%p542_p6)
}
  0x4c   :  { %s546_s26 = scalar_lea.vmem %s67_s1, 16  ;;  %s550_s2 = scalar_lea.vmem %s67_s1, 32 }
  0x4d   :  { %p547_p7 = scmp.ne.s32.totalorder %s67_s1, %s546_s26  ;;  %p551_p8 = scmp.lt.s32.totalorder %s67_s1, %s67_s1 }
  0x4e   :  { %p552_p9 = scmp.lt.s32.totalorder %s550_s2, %s546_s26 }
  0x50   :  { %p553_p10 = por %p552_p9, %p551_p8 }
  0x52   :  { %p554_p11 = pnand %p553_p10, %p547_p7 }
  0x54   :  { %557 = shalt.err (!%p554_p11)
}
  0x55   :  { %69 = dma.hbm_to_vmem [thread:$0]  %s722_s4, 16, %s67_s1, [#allocation9]  }
  0x56   :  { %580 = dma.done.wait [#allocation3], 128  }
  0x57   :  { %581 = vsyncadd [#allocation3], 4294967168 }
  0x58   :  { %582 = dma.done.wait [#allocation6], 1040  }
  0x59   :  { %583 = vsyncadd [#allocation6], 4294966256 }
  0x5a   :  { %584 = dma.done.wait [#allocation9], 1040  }
  0x5b   :  { %585 = vsyncadd [#allocation9], 4294966256  ;;  %v595_v0 = vmov 0.0   ;;  %vm596_vm0 = vmmov 0   ;;  %v431_v1 = vld [vmem:[#allocation5] sm:$0xff]   ;;  %v432_v2 = vld [vmem:[#allocation5 + $0x8] sm:$0xff]  }
  0x5c   :  { %379 = vmatprep.subr.bf16.mxu0 %v595_v0  ;;  %395 = vmatprep.mubr.msk.bf16.mxu0 %vm596_vm0, %v595_v0  ;;  %v433_v3 = vld [vmem:[#allocation5 + $0x10] sm:$0xff]   ;;  %v440_v4 = vld [vmem:[#allocation8] sm:$0xff]   ;;  %v434_v5 = vld [vmem:[#allocation5 + $0x18] sm:$0xff]   ;;  %s597_s4 = smov [#allocation11]  }
  0x5d   :  { %399 = vmatprep.subr.bf16.mxu1 %v595_v0  ;;  %415 = vmatprep.mubr.msk.bf16.mxu1 %vm596_vm0, %v595_v0  ;;  %v441_v6 = vld [vmem:[#allocation8 + $0x8] sm:$0xff]   ;;  %v435_v7 = vld [vmem:[#allocation5 + $0x20] sm:$0xff]   ;;  %v442_v8 = vld [vmem:[#allocation8 + $0x10] sm:$0xff]   ;;  %s328_s28 = sshll.u32 %s597_s4, 4  ;;  %s329_s28 = int_to_ptr.vmem [resolvable:$true] %s328_s28 }
  0x5e   :  { %380 = vmatpush3.bf16.msra.mxu0 %v431_v1  ;;  %400 = vmatpush3.bf16.msra.mxu1 %v440_v4  ;;  %v436_v9 = vld [vmem:[#allocation5 + $0x28] sm:$0xff]   ;;  %v443_v10 = vld [vmem:[#allocation8 + $0x18] sm:$0xff]   ;;  %v437_v11 = vld [vmem:[#allocation5 + $0x30] sm:$0xff]   ;;  %s558_s29 = scalar_lea.vmem %s329_s28, 256  ;;  %p563_p13 = scmp.lt.s32.totalorder %s329_s28, %s329_s28 }
  0x5f   :  { %381 = vmatprep.subr.bf16.mxu0 %v595_v0  ;;  %401 = vmatprep.subr.bf16.mxu1 %v595_v0  ;;  %v444_v12 = vld [vmem:[#allocation8 + $0x20] sm:$0xff]   ;;  %v438_v13 = vld [vmem:[#allocation5 + $0x38] sm:$0xff]   ;;  %v445_v14 = vld [vmem:[#allocation8 + $0x28] sm:$0xff]   ;;  %p559_p12 = scmp.ne.s32.totalorder %s329_s28, %s558_s29  ;;  %p564_p0 = scmp.lt.s32.totalorder %s558_s29, %s558_s29 }
  0x60   :  { %v439_v15 = vld [vmem:[#allocation2] sm:$0xff]   ;;  %v342_v18 = vld [vmem:[#allocation7] ss:$0 sm:$0xff]  ;;  %v352_v28 = vld [vmem:[#allocation10] ss:$0 sm:$0xff] }
  0x61   :  { %v446_v16 = vld [vmem:[#allocation8 + $0x30] sm:$0xff]   ;;  %v447_v17 = vld [vmem:[#allocation8 + $0x38] sm:$0xff]   ;;  %p565_p1 = por %p564_p0, %p563_p13 }
  0x62   :  { %382 = vmatpush3.bf16.msra.mxu0 %v432_v2  ;;  %402 = vmatpush3.bf16.msra.mxu1 %v441_v6 }
  0x63   :  { %383 = vmatprep.subr.bf16.mxu0 %v595_v0  ;;  %403 = vmatprep.subr.bf16.mxu1 %v595_v0  ;;  %p566_p2 = pnand %p565_p1, %p559_p12 }
  0x66   :  { %384 = vmatpush3.bf16.msra.mxu0 %v433_v3  ;;  %404 = vmatpush3.bf16.msra.mxu1 %v442_v8 }
  0x67   :  { %385 = vmatprep.subr.bf16.mxu0 %v595_v0  ;;  %405 = vmatprep.subr.bf16.mxu1 %v595_v0 }
  0x6a   :  { %386 = vmatpush3.bf16.msra.mxu0 %v434_v5  ;;  %406 = vmatpush3.bf16.msra.mxu1 %v443_v10 }
  0x6b   :  { %387 = vmatprep.subr.bf16.mxu0 %v595_v0  ;;  %407 = vmatprep.subr.bf16.mxu1 %v595_v0 }
  0x6e   :  { %388 = vmatpush3.bf16.msra.mxu0 %v435_v7  ;;  %408 = vmatpush3.bf16.msra.mxu1 %v444_v12 }
  0x6f   :  { %389 = vmatprep.subr.bf16.mxu0 %v595_v0  ;;  %409 = vmatprep.subr.bf16.mxu1 %v595_v0 }
  0x72   :  { %390 = vmatpush3.bf16.msra.mxu0 %v436_v9  ;;  %410 = vmatpush3.bf16.msra.mxu1 %v445_v14 }
  0x73   :  { %391 = vmatprep.subr.bf16.mxu0 %v595_v0  ;;  %411 = vmatprep.subr.bf16.mxu1 %v595_v0 }
  0x76   :  { %392 = vmatpush3.bf16.msra.mxu0 %v437_v11  ;;  %412 = vmatpush3.bf16.msra.mxu1 %v446_v16 }
  0x77   :  { %393 = vmatprep.subr.bf16.mxu0 %v595_v0  ;;  %413 = vmatprep.subr.bf16.mxu1 %v595_v0 }
  0x7a   :  { %394 = vmatpush3.bf16.msra.mxu0 %v438_v13  ;;  %414 = vmatpush3.bf16.msra.mxu1 %v447_v17 }
  0x7d   :  { %396 = vmatmul.mubr.bf16.vlgmr.msra.gmra.mrb[0].mxu0 %v439_v15 }
 0x150   :  { %v199_v19 = vpop.f32.mrb[0].mxu0 }
 0x151   :  { %v200_v20 = vadd.f32 %v342_v18, %v199_v19  ;;  %v397_v21 = vpop.f32.mrb[1].mxu0 }
 0x152   :  { %v202_v22 = vpop.f32.mrb[2].mxu0 }
 0x153   :  { %v203_v23 = vadd.f32 %v342_v18, %v202_v22  ;;  %v398_v24 = vpop.f32.mrb[3].mxu0  ;;  %v206_v25 = vmax.f32 %v200_v20, 0.0 }
 0x155   :  { %v207_v26 = vmax.f32 %v203_v23, 0.0 }
 0x157   :  { %v208_v27 = vpack.c.bf16 %v207_v26, %v206_v25 }
 0x159   :  { %416 = vmatmul.mubr.bf16.vlgmr.msra.gmra.mrb[0].mxu1 %v208_v27 }
 0x22c   :  { %v314_v29 = vpop.f32.mrb[0].mxu1 }
 0x22d   :  { %v315_v30 = vadd.f32 %v352_v28, %v314_v29  ;;  %v417_v31 = vpop.f32.mrb[1].mxu1 }
 0x22e   :  { %v317_v32 = vpop.f32.mrb[2].mxu1 }
 0x22f   :  { %321 = vst [vmem:[#allocation11] sm:$0xff] %v315_v30  ;;  %v318_v33 = vadd.f32 %v352_v28, %v317_v32  ;;  %v418_v34 = vpop.f32.mrb[3].mxu1 }
 0x231   :  { %322 = vst [vmem:[#allocation11 + $0x8] sm:$0xff] %v318_v33 }
 0x232   :  { %569 = shalt.err (!%p566_p2)
}
 0x233   :  { %s570_s7 = scalar_lea.hbm %s723_s5, 256 }
 0x234   :  { %p571_p3 = scmp.ne.s32.totalorder %s723_s5, %s570_s7  ;;  %p574_p4 = scmp.lt.u32.totalorder %s570_s7, %s723_s5 }
 0x236   :  { %p576_p5 = pnand %p574_p4, %p571_p3 }
 0x238   :  { %579 = shalt.err (!%p576_p5)
}
 0x239   :  { %s598_s12 = smov 128   ;;  %s599_s13 = smov 8  }
 0x23a   :  { %334 = dma.vmem_to_hbm [thread:$0]  %s329_s28, 256, %s723_s5, [#allocation4], %s598_s12, %s598_s12, %s599_s13  }
 0x23b   :  { %586 = dma.done.wait [#allocation4], 256  }
 0x23c   :  { %587 = vsyncadd [#allocation4], 4294967040 }
 0x23d   :  { %338 = vsyncpa [#allocation3], 1 }
 0x23e   :  { %339 = vsyncpa [#allocation6], 1 }
 0x23f   :  { %340 = vsyncpa [#allocation9], 1 }
 0x240   :  { %341 = vsyncpa [#allocation4], 1 }

</bundles_post_ra>
